<compile_context>
chip_gen: v7x
topology: tpu7x:2x2x1
jax: 0.10.0
libtpu: 0.0.40
codegen_flags: <defaults>
</compile_context>

<pallas_src>
import math

import jax
import jax.numpy as jnp
from jax.experimental import pallas as pl
from jax.experimental.pallas import tpu as pltpu


IN_DIM = 28 * 28   # 784
HID = 64           # logical hidden width
OUT = 10           # logical number of classes
HID_P = 128        # lane-padded hidden width
OUT_P = 128        # lane-padded class width
NEG_LOGIT = -1e30  # padded-class bias -> exp underflows to exactly 0 in softmax


def _cdiv(a, b):
    return -(-a // b)


def _round_up(x, m):
    return ((x + m - 1) // m) * m


def mlp_softmax_kernel(x_ref, w1_ref, b1_ref, w2_ref, b2_ref, w3_ref, b3_ref, o_ref):
    # bf16 MXU path with f32 accumulation; biases added in f32.
    x = x_ref[...].astype(jnp.bfloat16)                               # (TB, 784)

    # Linear(784 -> 128 padded) + ReLU
    h1 = jnp.dot(x, w1_ref[...], preferred_element_type=jnp.float32) + b1_ref[...]
    h1 = jnp.maximum(h1, 0.0)

    # Linear(128 -> 128 padded) + ReLU
    h2 = jnp.dot(h1.astype(jnp.bfloat16), w2_ref[...],
                 preferred_element_type=jnp.float32) + b2_ref[...]
    h2 = jnp.maximum(h2, 0.0)

    # Linear(128 -> 128 padded); padded classes carry bias -1e30
    logits = jnp.dot(h2.astype(jnp.bfloat16), w3_ref[...],
                     preferred_element_type=jnp.float32) + b3_ref[...]

    # Softmax over the padded class axis; padded lanes contribute exp(-huge) == 0.
    m = jnp.max(logits, axis=-1, keepdims=True)
    e = jnp.exp(logits - m)
    s = jnp.sum(e, axis=-1, keepdims=True)
    o_ref[...] = e / s                                                # exact normalization


def pad_params(params):
    """Zero-pad weights to lane-dense shapes (cast to bf16); padded class biases get -1e30."""
    w1, b1, w2, b2, w3, b3 = params
    w1p = jnp.pad(w1, ((0, 0), (0, HID_P - HID))).astype(jnp.bfloat16)            # (784, 128)
    b1p = jnp.pad(b1, ((0, 0), (0, HID_P - HID)))                                 # (1, 128) f32
    w2p = jnp.pad(w2, ((0, HID_P - HID), (0, HID_P - HID))).astype(jnp.bfloat16)  # (128, 128)
    b2p = jnp.pad(b2, ((0, 0), (0, HID_P - HID)))                                 # (1, 128) f32
    w3p = jnp.pad(w3, ((0, HID_P - HID), (0, OUT_P - OUT))).astype(jnp.bfloat16)  # (128, 128)
    b3p = jnp.pad(b3, ((0, 0), (0, OUT_P - OUT)),
                  constant_values=jnp.float32(NEG_LOGIT))                         # (1, 128) f32
    return w1p, b1p, w2p, b2p, w3p, b3p


def net_forward(x_nchw, params, tb=2048):
    """x_nchw: (B, 1, 28, 28) float32 -> (B, 10) softmax probabilities."""
    B = x_nchw.shape[0]
    x_flat = x_nchw.reshape(B, -1).astype(jnp.float32)                # flatten(start_dim=1)

    # Adaptive batch tile: choose the number of tiles first, then size each tile
    # (multiple of 8 sublanes) so padding waste is bounded (< 8 rows per tile).
    n_tiles = max(1, _cdiv(B, tb))
    TB = min(tb, _round_up(_cdiv(B, n_tiles), 8))
    B_pad = n_tiles * TB
    if B_pad != B:
        x_flat = jnp.pad(x_flat, ((0, B_pad - B), (0, 0)))

    w1, b1, w2, b2, w3, b3 = pad_params(params)

    resident = lambda shape: pl.BlockSpec(shape, lambda i: (0, 0))    # weights stay in VMEM

    cost = pl.CostEstimate(
        flops=2 * B_pad * (IN_DIM * HID_P + HID_P * HID_P + HID_P * OUT_P),
        transcendentals=B_pad * OUT_P,
        bytes_accessed=(4 * B_pad * (IN_DIM + OUT_P)
                        + 2 * (IN_DIM * HID_P + HID_P * HID_P + HID_P * OUT_P)
                        + 4 * (2 * HID_P + OUT_P)),
    )

    out_padded = pl.pallas_call(
        mlp_softmax_kernel,
        out_shape=jax.ShapeDtypeStruct((B_pad, OUT_P), jnp.float32),
        grid=(n_tiles,),
        in_specs=[
            pl.BlockSpec((TB, IN_DIM), lambda i: (i, 0)),             # streamed batch tile
            resident((IN_DIM, HID_P)), resident((1, HID_P)),
            resident((HID_P, HID_P)),  resident((1, HID_P)),
            resident((HID_P, OUT_P)),  resident((1, OUT_P)),
        ],
        out_specs=pl.BlockSpec((TB, OUT_P), lambda i: (i, 0)),
        compiler_params=pltpu.CompilerParams(
            dimension_semantics=("parallel",),
            vmem_limit_bytes=48 * 1024 * 1024,
        ),
        cost_estimate=cost,
    )(x_flat, w1, b1, w2, b2, w3, b3)

    return out_padded[:B, :OUT]


def net_forward_ref(x_nchw, params):
    """Pure-JAX f32 reference (same semantics as the PyTorch module)."""
    w1, b1, w2, b2, w3, b3 = params
    x = x_nchw.reshape(x_nchw.shape[0], -1).astype(jnp.float32)
    h1 = jnp.maximum(x @ w1 + b1, 0.0)
    h2 = jnp.maximum(h1 @ w2 + b2, 0.0)
    logits = h2 @ w3 + b3
    return jax.nn.softmax(logits, axis=1)


def init_params(key):
    """Deterministic init matching torch.nn.Linear default: U(-1/sqrt(fan_in), 1/sqrt(fan_in))."""
    def linear(key, fan_in, fan_out):
        kw, kb = jax.random.split(key)
        bound = 1.0 / math.sqrt(fan_in)
        w = jax.random.uniform(kw, (fan_in, fan_out), jnp.float32, -bound, bound)
        b = jax.random.uniform(kb, (1, fan_out), jnp.float32, -bound, bound)
        return w, b

    k1, k2, k3 = jax.random.split(key, 3)
    w1, b1 = linear(k1, IN_DIM, HID)
    w2, b2 = linear(k2, HID, HID)
    w3, b3 = linear(k3, HID, OUT)
    return (w1, b1, w2, b2, w3, b3)


if __name__ == "__main__":
    key = jax.random.PRNGKey(0)
    k_params, k_x = jax.random.split(key)

    params = init_params(k_params)
    # Small batch of MNIST-shaped inputs (NCHW like PyTorch).
    x = jax.random.normal(k_x, (8, 1, 28, 28), dtype=jnp.float32)

    out = net_forward(x, params)
    out = jax.block_until_ready(out)

    # Sanity checks: shape, rows sum to 1 (exact divide), close to the f32 reference
    # (tolerance loosened for the bf16 MXU path).
    assert out.shape == (8, 10)
    assert bool(jnp.allclose(jnp.sum(out, axis=1), 1.0, atol=1e-3))
    ref = net_forward_ref(x, params)
    assert bool(jnp.allclose(out, ref, atol=2e-2, rtol=2e-2))
    assert bool(jnp.all(jnp.argmax(out, axis=1) == jnp.argmax(ref, axis=1)))

    print("KERNEL_OK")
</pallas_src>

<mosaic_0001>
module attributes {stable_mosaic.version = 11 : i64} {
  func.func @mlp_softmax_kernel(%arg0: i32, %arg1: memref<8x784xf32, #tpu.memory_space<vmem>>, %arg2: memref<784x128xbf16, #tpu.memory_space<vmem>>, %arg3: memref<1x128xf32, #tpu.memory_space<vmem>>, %arg4: memref<128x128xbf16, #tpu.memory_space<vmem>>, %arg5: memref<1x128xf32, #tpu.memory_space<vmem>>, %arg6: memref<128x128xbf16, #tpu.memory_space<vmem>>, %arg7: memref<1x128xf32, #tpu.memory_space<vmem>>, %arg8: memref<8x128xf32, #tpu.memory_space<vmem>>) attributes {dimension_semantics = [#tpu.dimension_semantics<parallel>], iteration_bounds = array<i64: 1>, scalar_prefetch = 0 : i64, scratch_operands = 0 : i64, tpu.core_type = #tpu.core_type<tc>, window_params = [{transform_indices = @transform_0, window_bounds = array<i64: 8, 784>}, {pipeline_mode = #tpu.pipeline_mode<synchronous>, transform_indices = @transform_1, window_bounds = array<i64: 784, 128>}, {pipeline_mode = #tpu.pipeline_mode<synchronous>, transform_indices = @transform_2, window_bounds = array<i64: 1, 128>}, {pipeline_mode = #tpu.pipeline_mode<synchronous>, transform_indices = @transform_3, window_bounds = array<i64: 128, 128>}, {pipeline_mode = #tpu.pipeline_mode<synchronous>, transform_indices = @transform_4, window_bounds = array<i64: 1, 128>}, {pipeline_mode = #tpu.pipeline_mode<synchronous>, transform_indices = @transform_5, window_bounds = array<i64: 128, 128>}, {pipeline_mode = #tpu.pipeline_mode<synchronous>, transform_indices = @transform_6, window_bounds = array<i64: 1, 128>}, {transform_indices = @transform_7, window_bounds = array<i64: 8, 128>}]} {
    %c0 = arith.constant 0 : index
    %c0_0 = arith.constant 0 : index
    %0 = vector.load %arg1[%c0, %c0_0] : memref<8x784xf32, #tpu.memory_space<vmem>>, vector<8x784xf32>
    %1 = arith.truncf %0 : vector<8x784xf32> to vector<8x784xbf16>
    %c0_1 = arith.constant 0 : index
    %c0_2 = arith.constant 0 : index
    %2 = vector.load %arg2[%c0_1, %c0_2] : memref<784x128xbf16, #tpu.memory_space<vmem>>, vector<784x128xbf16>
    %cst = arith.constant dense<0.000000e+00> : vector<8x128xf32>
    %3 = tpu.matmul %1, %2, %cst {dimension_numbers = #tpu.dot_dimension_numbers<[1], [0], [0], [1], [0, 0, 1, 1], [], []>} : vector<8x784xbf16>, vector<784x128xbf16>, vector<8x128xf32> -> vector<8x128xf32>
    %c0_3 = arith.constant 0 : index
    %c0_4 = arith.constant 0 : index
    %4 = vector.load %arg3[%c0_3, %c0_4] : memref<1x128xf32, #tpu.memory_space<vmem>>, vector<1x128xf32>
    %5 = vector.broadcast %4 : vector<1x128xf32> to vector<8x128xf32>
    %6 = arith.addf %3, %5 : vector<8x128xf32>
    %cst_5 = arith.constant 0.000000e+00 : f32
    %7 = vector.broadcast %cst_5 : f32 to vector<8x128xf32>
    %8 = arith.maximumf %6, %7 : vector<8x128xf32>
    %9 = arith.truncf %8 : vector<8x128xf32> to vector<8x128xbf16>
    %c0_6 = arith.constant 0 : index
    %c0_7 = arith.constant 0 : index
    %10 = vector.load %arg4[%c0_6, %c0_7] : memref<128x128xbf16, #tpu.memory_space<vmem>>, vector<128x128xbf16>
    %cst_8 = arith.constant dense<0.000000e+00> : vector<8x128xf32>
    %11 = tpu.matmul %9, %10, %cst_8 {dimension_numbers = #tpu.dot_dimension_numbers<[1], [0], [0], [1], [0, 0, 1, 1], [], []>} : vector<8x128xbf16>, vector<128x128xbf16>, vector<8x128xf32> -> vector<8x128xf32>
    %c0_9 = arith.constant 0 : index
    %c0_10 = arith.constant 0 : index
    %12 = vector.load %arg5[%c0_9, %c0_10] : memref<1x128xf32, #tpu.memory_space<vmem>>, vector<1x128xf32>
    %13 = vector.broadcast %12 : vector<1x128xf32> to vector<8x128xf32>
    %14 = arith.addf %11, %13 : vector<8x128xf32>
    %cst_11 = arith.constant 0.000000e+00 : f32
    %15 = vector.broadcast %cst_11 : f32 to vector<8x128xf32>
    %16 = arith.maximumf %14, %15 : vector<8x128xf32>
    %17 = arith.truncf %16 : vector<8x128xf32> to vector<8x128xbf16>
    %c0_12 = arith.constant 0 : index
    %c0_13 = arith.constant 0 : index
    %18 = vector.load %arg6[%c0_12, %c0_13] : memref<128x128xbf16, #tpu.memory_space<vmem>>, vector<128x128xbf16>
    %cst_14 = arith.constant dense<0.000000e+00> : vector<8x128xf32>
    %19 = tpu.matmul %17, %18, %cst_14 {dimension_numbers = #tpu.dot_dimension_numbers<[1], [0], [0], [1], [0, 0, 1, 1], [], []>} : vector<8x128xbf16>, vector<128x128xbf16>, vector<8x128xf32> -> vector<8x128xf32>
    %c0_15 = arith.constant 0 : index
    %c0_16 = arith.constant 0 : index
    %20 = vector.load %arg7[%c0_15, %c0_16] : memref<1x128xf32, #tpu.memory_space<vmem>>, vector<1x128xf32>
    %21 = vector.broadcast %20 : vector<1x128xf32> to vector<8x128xf32>
    %22 = arith.addf %19, %21 : vector<8x128xf32>
    %cst_17 = arith.constant dense<0xFF800000> : vector<8xf32>
    %23 = vector.multi_reduction <maximumf>, %22, %cst_17 [1] : vector<8x128xf32> to vector<8xf32>
    %24 = vector.shape_cast %23 : vector<8xf32> to vector<8x1xf32>
    %25 = vector.broadcast %24 : vector<8x1xf32> to vector<8x128xf32>
    %26 = arith.subf %22, %25 : vector<8x128xf32>
    %27 = math.exp %26 : vector<8x128xf32>
    %cst_18 = arith.constant dense<0.000000e+00> : vector<8xf32>
    %28 = vector.multi_reduction <add>, %27, %cst_18 [1] : vector<8x128xf32> to vector<8xf32>
    %29 = vector.shape_cast %28 : vector<8xf32> to vector<8x1xf32>
    %30 = vector.broadcast %29 : vector<8x1xf32> to vector<8x128xf32>
    %31 = arith.divf %27, %30 : vector<8x128xf32>
    %c0_19 = arith.constant 0 : index
    %c0_20 = arith.constant 0 : index
    %32 = vector.load %arg8[%c0_19, %c0_20] : memref<8x128xf32, #tpu.memory_space<vmem>>, vector<8x128xf32>
    tpu.vector_store %arg8[%c0_19, %c0_20], %31 {strides = array<i32>} : memref<8x128xf32, #tpu.memory_space<vmem>>, vector<8x128xf32>,
    return
  }
  func.func @transform_0(%arg0: i32) -> (i32, i32) {
    %c0_i32 = arith.constant 0 : i32
    %c0_i32_0 = arith.constant 0 : i32
    return %arg0, %c0_i32 : i32, i32
  }
  func.func @transform_1(%arg0: i32) -> (i32, i32) {
    %c0_i32 = arith.constant 0 : i32
    %c0_i32_0 = arith.constant 0 : i32
    %c0_i32_1 = arith.constant 0 : i32
    return %c0_i32, %c0_i32_0 : i32, i32
  }
  func.func @transform_2(%arg0: i32) -> (i32, i32) {
    %c0_i32 = arith.constant 0 : i32
    %c0_i32_0 = arith.constant 0 : i32
    %c0_i32_1 = arith.constant 0 : i32
    return %c0_i32, %c0_i32_0 : i32, i32
  }
  func.func @transform_3(%arg0: i32) -> (i32, i32) {
    %c0_i32 = arith.constant 0 : i32
    %c0_i32_0 = arith.constant 0 : i32
    %c0_i32_1 = arith.constant 0 : i32
    return %c0_i32, %c0_i32_0 : i32, i32
  }
  func.func @transform_4(%arg0: i32) -> (i32, i32) {
    %c0_i32 = arith.constant 0 : i32
    %c0_i32_0 = arith.constant 0 : i32
    %c0_i32_1 = arith.constant 0 : i32
    return %c0_i32, %c0_i32_0 : i32, i32
  }
  func.func @transform_5(%arg0: i32) -> (i32, i32) {
    %c0_i32 = arith.constant 0 : i32
    %c0_i32_0 = arith.constant 0 : i32
    %c0_i32_1 = arith.constant 0 : i32
    return %c0_i32, %c0_i32_0 : i32, i32
  }
  func.func @transform_6(%arg0: i32) -> (i32, i32) {
    %c0_i32 = arith.constant 0 : i32
    %c0_i32_0 = arith.constant 0 : i32
    %c0_i32_1 = arith.constant 0 : i32
    return %c0_i32, %c0_i32_0 : i32, i32
  }
  func.func @transform_7(%arg0: i32) -> (i32, i32) {
    %c0_i32 = arith.constant 0 : i32
    %c0_i32_0 = arith.constant 0 : i32
    return %arg0, %c0_i32 : i32, i32
  }
}

</mosaic_0001>

<bundles_post_ra>
// kernel: tpu_custom_call.1
= control target key start
LH: loop header
LB: loop body
LE: loop exit
PB: predicated region body
PF: predicated region fallthrough
CT: control target
= control target key end

     0   :  { %12 = vsyncpa [#allocation3], 0  ;;  %s1458_s0 = inlined_call_operand.hbm [shape: f32[8,784], index: 0, kind: input, shape index: {}]   ;;  %s1459_s1 = inlined_call_operand.hbm [shape: bf16[784,128], index: 1, kind: input, shape index: {}]   ;;  %s1460_s2 = inlined_call_operand.vmem [shape: f32[1,128], index: 2, kind: input, shape index: {}]   ;;  %s1461_s3 = inlined_call_operand.hbm [shape: bf16[128,128], index: 3, kind: input, shape index: {}]   ;;  %s1462_s4 = inlined_call_operand.vmem [shape: f32[1,128], index: 4, kind: input, shape index: {}]   ;;  %s1463_s5 = inlined_call_operand.hbm [shape: bf16[128,128], index: 5, kind: input, shape index: {}]   ;;  %s1464_s6 = inlined_call_operand.vmem [shape: f32[1,128], index: 6, kind: input, shape index: {}]   ;;  %s1465_s7 = inlined_call_operand.hbm [shape: f32[8,128], index: 7, kind: output, shape index: {}]  }
   0x1   :  { %13 = vsyncpa [#allocation6], 0 }
   0x2   :  { %14 = vsyncpa [#allocation9], 0 }
   0x3   :  { %15 = vsyncpa [#allocation4], 0  ;;  %s1308_s24 = smov [#allocation5]   ;;  %s1190_s28 = scalar_lea.hbm %s1459_s1, 6272 }
   0x4   :  { %s31_s25 = sshll.u32 %s1308_s24, 4  ;;  %p1191_p0 = scmp.ne.s32.totalorder %s1459_s1, %s1190_s28  ;;  %s32_s25 = int_to_ptr.vmem [resolvable:$true] %s31_s25 }
   0x5   :  { %p1194_p1 = scmp.lt.u32.totalorder %s1190_s28, %s1459_s1 }
   0x7   :  { %p1196_p2 = pnand %p1194_p1, %p1191_p0 }
   0x9   :  { %1199 = shalt.err (!%p1196_p2)
}
   0xa   :  { %s1200_s10 = scalar_lea.vmem %s32_s25, 6272  ;;  %p1205_p4 = scmp.lt.s32.totalorder %s32_s25, %s32_s25 }
   0xb   :  { %p1201_p3 = scmp.ne.s32.totalorder %s32_s25, %s1200_s10  ;;  %p1206_p5 = scmp.lt.s32.totalorder %s1200_s10, %s1200_s10 }
   0xd   :  { %p1207_p6 = por %p1206_p5, %p1205_p4 }
   0xf   :  { %p1208_p7 = pnand %p1207_p6, %p1201_p3 }
  0x11   :  { %1211 = shalt.err (!%p1208_p7)
}
  0x12   :  { %s1309_s11 = smov 64   ;;  %s1310_s12 = smov 4  }
  0x13   :  { %37 = dma.hbm_to_vmem [thread:$0]  %s1459_s1, 6272, %s32_s25, [#allocation6], %s1309_s11, %s1309_s11, %s1310_s12  }
  0x14   :  { %s1311_s15 = smov [#allocation2]   ;;  %s1312_s17 = smov [#allocation7]  }
  0x15   :  { %s22_s16 = sshll.u32 %s1311_s15, 4  ;;  %s45_s18 = sshll.u32 %s1312_s17, 4  ;;  %s23_s16 = int_to_ptr.vmem [resolvable:$true] %s22_s16  ;;  %s46_s18 = int_to_ptr.vmem [resolvable:$true] %s45_s18 }
  0x16   :  { %s1212_s21 = scalar_lea.hbm %s1458_s0, 896 }
  0x17   :  { %p1213_p8 = scmp.ne.s32.totalorder %s1458_s0, %s1212_s21  ;;  %p1216_p9 = scmp.lt.u32.totalorder %s1212_s21, %s1458_s0 }
  0x19   :  { %p1218_p10 = pnand %p1216_p9, %p1213_p8 }
  0x1b   :  { %1221 = shalt.err (!%p1218_p10)
}
  0x1c   :  { %s1222_s1 = scalar_lea.vmem %s23_s16, 896  ;;  %p1227_p12 = scmp.lt.s32.totalorder %s23_s16, %s23_s16 }
  0x1d   :  { %p1223_p11 = scmp.ne.s32.totalorder %s23_s16, %s1222_s1  ;;  %p1228_p13 = scmp.lt.s32.totalorder %s1222_s1, %s1222_s1 }
  0x1f   :  { %p1229_p0 = por %p1228_p13, %p1227_p12 }
  0x21   :  { %p1230_p1 = pnand %p1229_p0, %p1223_p11 }
  0x23   :  { %1233 = shalt.err (!%p1230_p1)
}
  0x24   :  { %25 = dma.hbm_to_vmem [thread:$0]  %s1458_s0, 896, %s23_s16, [#allocation3]  }
  0x25   :  { %s1234_s30 = scalar_lea.hbm %s1461_s3, 1024 }
  0x26   :  { %p1235_p2 = scmp.ne.s32.totalorder %s1461_s3, %s1234_s30  ;;  %p1238_p3 = scmp.lt.u32.totalorder %s1234_s30, %s1461_s3 }
  0x28   :  { %p1240_p4 = pnand %p1238_p3, %p1235_p2 }
  0x2a   :  { %1243 = shalt.err (!%p1240_p4)
}
  0x2b   :  { %s1244_s14 = scalar_lea.vmem %s46_s18, 1024  ;;  %p1249_p6 = scmp.lt.s32.totalorder %s46_s18, %s46_s18 }
  0x2c   :  { %p1245_p5 = scmp.ne.s32.totalorder %s46_s18, %s1244_s14  ;;  %p1250_p7 = scmp.lt.s32.totalorder %s1244_s14, %s1244_s14 }
  0x2e   :  { %p1251_p8 = por %p1250_p7, %p1249_p6 }
  0x30   :  { %p1252_p9 = pnand %p1251_p8, %p1245_p5 }
  0x32   :  { %1255 = shalt.err (!%p1252_p9)
}
  0x33   :  { %51 = dma.hbm_to_vmem [thread:$0]  %s1461_s3, 1024, %s46_s18, [#allocation6], %s1309_s11, %s1309_s11, %s1310_s12  }
  0x34   :  { %s1313_s16 = smov [#allocation8]   ;;  %s1256_s21 = scalar_lea.hbm %s1463_s5, 1024 }
  0x35   :  { %s59_s17 = sshll.u32 %s1313_s16, 4  ;;  %p1257_p10 = scmp.ne.s32.totalorder %s1463_s5, %s1256_s21  ;;  %s60_s17 = int_to_ptr.vmem [resolvable:$true] %s59_s17 }
  0x36   :  { %p1260_p11 = scmp.lt.u32.totalorder %s1256_s21, %s1463_s5 }
  0x38   :  { %p1262_p12 = pnand %p1260_p11, %p1257_p10 }
  0x3a   :  { %1265 = shalt.err (!%p1262_p12)
}
  0x3b   :  { %s1266_s1 = scalar_lea.vmem %s60_s17, 1024  ;;  %p1271_p0 = scmp.lt.s32.totalorder %s60_s17, %s60_s17 }
  0x3c   :  { %p1267_p13 = scmp.ne.s32.totalorder %s60_s17, %s1266_s1  ;;  %p1272_p1 = scmp.lt.s32.totalorder %s1266_s1, %s1266_s1 }
  0x3e   :  { %p1273_p2 = por %p1272_p1, %p1271_p0 }
  0x40   :  { %p1274_p3 = pnand %p1273_p2, %p1267_p13 }
  0x42   :  { %1277 = shalt.err (!%p1274_p3)
}
  0x43   :  { %65 = dma.hbm_to_vmem [thread:$0]  %s1463_s5, 1024, %s60_s17, [#allocation9], %s1309_s11, %s1309_s11, %s1310_s12  }
  0x44   :  { %1300 = dma.done.wait [#allocation3], 896  }
  0x45   :  { %1301 = vsyncadd [#allocation3], 4294966400 }
  0x46   :  { %1302 = dma.done.wait [#allocation6], 7296  }
  0x47   :  { %1303 = vsyncadd [#allocation6], 4294960000 }
  0x48   :  { %1304 = dma.done.wait [#allocation9], 1024  }
  0x49   :  { %1305 = vsyncadd [#allocation9], 4294966272  ;;  %v1121_v0 = vld [vmem:[#allocation5 + $0x40] sm:$0xff]   ;;  %v1125_v4 = vld [vmem:[#allocation5 + $0x48] sm:$0xff]   ;;  %v1314_v44 = vmov 0.0   ;;  %vm1315_vm0 = vmmov 0  }
  0x4a   :  { %v1122_v1 = vld [vmem:[#allocation5] sm:$0xff]   ;;  %980 = vmatprep.subr.bf16.mxu0 %v1121_v0  ;;  %v1126_v5 = vld [vmem:[#allocation5 + $0x8] sm:$0xff]   ;;  %v1129_v8 = vld [vmem:[#allocation5 + $0x50] sm:$0xff]   ;;  %vm494_vm1 = vcmask 130048  }
  0x4b   :  { %v1123_v2 = vld [vmem:[#allocation5 + $0xc0] sm:$0xff]   ;;  %981 = vmatpush3.bf16.msra.mxu0 %v1122_v1  ;;  %v1127_v6 = vld [vmem:[#allocation5 + $0xc8] sm:$0xff]   ;;  %v1130_v9 = vld [vmem:[#allocation5 + $0x10] sm:$0xff]  }
  0x4c   :  { %v1124_v3 = vld [vmem:[#allocation5 + $0x80] sm:$0xff]   ;;  %1002 = vmatprep.subr.bf16.mxu1 %v1123_v2  ;;  %982 = vmatprep.subr.bf16.mxu0 %v1125_v4  ;;  %v1128_v7 = vld [vmem:[#allocation5 + $0x88] sm:$0xff]   ;;  %v1131_v10 = vld [vmem:[#allocation5 + $0xd0] sm:$0xff]  }
  0x4d   :  { %1003 = vmatpush3.bf16.msra.mxu1 %v1124_v3  ;;  %v1132_v11 = vld [vmem:[#allocation5 + $0x90] sm:$0xff]   ;;  %v1133_v12 = vld [vmem:[#allocation5 + $0x58] sm:$0xff]   ;;  %v1137_v16 = vld [vmem:[#allocation5 + $0x60] sm:$0xff]  }
  0x4e   :  { %1004 = vmatprep.subr.bf16.mxu1 %v1127_v6  ;;  %v1134_v13 = vld [vmem:[#allocation5 + $0x18] sm:$0xff]   ;;  %v1138_v17 = vld [vmem:[#allocation5 + $0x20] sm:$0xff]   ;;  %v1141_v20 = vld [vmem:[#allocation5 + $0x68] sm:$0xff]  }
  0x4f   :  { %983 = vmatpush3.bf16.msra.mxu0 %v1126_v5  ;;  %v1135_v14 = vld [vmem:[#allocation5 + $0xd8] sm:$0xff]   ;;  %v1139_v18 = vld [vmem:[#allocation5 + $0xe0] sm:$0xff]   ;;  %v1142_v21 = vld [vmem:[#allocation5 + $0x28] sm:$0xff]  }
  0x50   :  { %984 = vmatprep.subr.bf16.mxu0 %v1129_v8  ;;  %v1136_v15 = vld [vmem:[#allocation5 + $0x98] sm:$0xff]   ;;  %v1140_v19 = vld [vmem:[#allocation5 + $0xa0] sm:$0xff]   ;;  %v1143_v22 = vld [vmem:[#allocation5 + $0xe8] sm:$0xff]  }
  0x51   :  { %1005 = vmatpush3.bf16.msra.mxu1 %v1128_v7  ;;  %v1144_v23 = vld [vmem:[#allocation5 + $0xa8] sm:$0xff]   ;;  %v1145_v24 = vld [vmem:[#allocation5 + $0x70] sm:$0xff]   ;;  %v1149_v28 = vld [vmem:[#allocation5 + $0x78] sm:$0xff]  }
  0x52   :  { %1006 = vmatprep.subr.bf16.mxu1 %v1131_v10  ;;  %v1146_v25 = vld [vmem:[#allocation5 + $0x30] sm:$0xff]   ;;  %v1150_v29 = vld [vmem:[#allocation5 + $0x38] sm:$0xff]   ;;  %v81_v34 = vld [vmem:[#allocation2] sm:$0xff] }
  0x53   :  { %985 = vmatpush3.bf16.msra.mxu0 %v1130_v9  ;;  %v1147_v26 = vld [vmem:[#allocation5 + $0xf0] sm:$0xff]   ;;  %v1151_v30 = vld [vmem:[#allocation5 + $0xf8] sm:$0xff]   ;;  %v88_v35 = vpack.c.bf16 %v81_v34, %v81_v34  ;;  %v1153_v36 = vld [vmem:[#allocation5 + $0x140] sm:$0xff]  }
  0x54   :  { %986 = vmatprep.subr.bf16.mxu0 %v1133_v12  ;;  %v1148_v27 = vld [vmem:[#allocation5 + $0xb0] sm:$0xff]   ;;  %v1152_v33 = vld [vmem:[#allocation5 + $0xb8] sm:$0xff]   ;;  %v84_v37 = vld [vmem:[#allocation2 + $0x18] sm:$0xff] }
  0x55   :  { %1007 = vmatpush3.bf16.msra.mxu1 %v1132_v11  ;;  %v82_v31 = vld [vmem:[#allocation2 + $0x8] sm:$0xff]  ;;  %v91_v38 = vpack.c.bf16 %v84_v37, %v84_v37  ;;  %v1154_v39 = vld [vmem:[#allocation5 + $0x100] sm:$0xff]   ;;  %v83_v40 = vld [vmem:[#allocation2 + $0x10] sm:$0xff] }
  0x56   :  { %1008 = vmatprep.subr.bf16.mxu1 %v1135_v14  ;;  %v89_v32 = vpack.c.bf16 %v82_v31, %v82_v31  ;;  %v90_v41 = vpack.c.bf16 %v83_v40, %v83_v40  ;;  %v1155_v42 = vld [vmem:[#allocation5 + $0x148] sm:$0xff]   ;;  %v1157_v45 = vld [vmem:[#allocation5 + $0x150] sm:$0xff]   ;;  %v1159_v47 = vld [vmem:[#allocation5 + $0x158] sm:$0xff]  }
  0x57   :  { %987 = vmatpush3.bf16.msra.mxu0 %v1134_v13  ;;  %570 = vmatprep.mubr.bf16.mxu1 %v91_v38  ;;  %v1156_v43 = vld [vmem:[#allocation5 + $0x108] sm:$0xff]   ;;  %v1158_v46 = vld [vmem:[#allocation5 + $0x110] sm:$0xff]   ;;  %v1160_v48 = vld [vmem:[#allocation5 + $0x118] sm:$0xff]  }
  0x58   :  { %988 = vmatprep.subr.bf16.mxu0 %v1137_v16  ;;  %530 = vmatprep.mubr.bf16.mxu0 %v89_v32  ;;  %v1161_v49 = vld [vmem:[#allocation5 + $0x160] sm:$0xff]   ;;  %v1163_v51 = vld [vmem:[#allocation5 + $0x168] sm:$0xff]   ;;  %v86_v54 = vld [vmem:[#allocation2 + $0x28] sm:$0xff] }
  0x59   :  { %1009 = vmatpush3.bf16.msra.mxu1 %v1136_v15  ;;  %v1162_v50 = vld [vmem:[#allocation5 + $0x120] sm:$0xff]   ;;  %v1164_v52 = vld [vmem:[#allocation5 + $0x128] sm:$0xff]   ;;  %v1165_v55 = vld [vmem:[#allocation5 + $0x170] sm:$0xff]   ;;  %v93_v56 = vpack.c.bf16 %v86_v54, %v86_v54 }
  0x5a   :  { %1010 = vmatprep.subr.bf16.mxu1 %v1139_v18  ;;  %v1169_v53 = vld [vmem:[#allocation5 + $0x180] sm:$0xff]   ;;  %v87_v57 = vld [vmem:[#allocation2 + $0x30] sm:$0xff]  ;;  %v1166_v59 = vld [vmem:[#allocation5 + $0x130] sm:$0xff]  }
  0x5b   :  { %989 = vmatpush3.bf16.msra.mxu0 %v1138_v17  ;;  %v94_v58 = vpack.c.bf16 %v87_v57, %v87_v57  ;;  %v1167_v60 = vld [vmem:[#allocation5 + $0x178] sm:$0xff]   ;;  %v85_v62 = vld [vmem:[#allocation2 + $0x20] sm:$0xff]  ;;  %v1171_v1 = vld [vmem:[#allocation7 + $0x8] sm:$0xff]  }
  0x5c   :  { %990 = vmatprep.subr.bf16.mxu0 %v1141_v20  ;;  %v1168_v61 = vld [vmem:[#allocation5 + $0x138] sm:$0xff]   ;;  %v92_v63 = vpack.c.bf16 %v85_v62, %v85_v62  ;;  %v1170_v0 = vld [vmem:[#allocation7] sm:$0xff]   ;;  %v1173_v3 = vld [vmem:[#allocation7 + $0x18] sm:$0xff]  }
  0x5d   :  { %1011 = vmatpush3.bf16.msra.mxu1 %v1140_v19  ;;  %v1172_v2 = vld [vmem:[#allocation7 + $0x10] sm:$0xff]   ;;  %v1174_v4 = vld [vmem:[#allocation7 + $0x20] sm:$0xff]   ;;  %v1175_v5 = vld [vmem:[#allocation7 + $0x28] sm:$0xff]  }
  0x5e   :  { %1012 = vmatprep.subr.bf16.mxu1 %v1143_v22  ;;  %v1176_v6 = vld [vmem:[#allocation7 + $0x30] sm:$0xff]   ;;  %v1177_v7 = vld [vmem:[#allocation7 + $0x38] sm:$0xff]   ;;  %v1178_v8 = vld [vmem:[#allocation8] sm:$0xff]  }
  0x5f   :  { %991 = vmatpush3.bf16.msra.mxu0 %v1142_v21  ;;  %v1179_v9 = vld [vmem:[#allocation8 + $0x8] sm:$0xff]   ;;  %v1180_v10 = vld [vmem:[#allocation8 + $0x10] sm:$0xff]   ;;  %v1181_v11 = vld [vmem:[#allocation8 + $0x18] sm:$0xff]  }
  0x60   :  { %992 = vmatprep.subr.bf16.mxu0 %v1145_v24  ;;  %v1182_v12 = vld [vmem:[#allocation8 + $0x20] sm:$0xff]   ;;  %v1183_v13 = vld [vmem:[#allocation8 + $0x28] sm:$0xff]   ;;  %v1184_v40 = vld [vmem:[#allocation8 + $0x30] sm:$0xff]  }
  0x61   :  { %1013 = vmatpush3.bf16.msra.mxu1 %v1144_v23  ;;  %v911_v15 = vld [vmem:[%s1460_s2] ss:$0 sm:$0xff] }
  0x62   :  { %1014 = vmatprep.subr.bf16.mxu1 %v1147_v26 }
  0x63   :  { %993 = vmatpush3.bf16.msra.mxu0 %v1146_v25 }
  0x64   :  { %994 = vmatprep.subr.bf16.mxu0 %v1149_v28 }
  0x65   :  { %1015 = vmatpush3.bf16.msra.mxu1 %v1148_v27 }
  0x66   :  { %1016 = vmatprep.subr.bf16.mxu1 %v1151_v30 }
  0x67   :  { %995 = vmatpush3.bf16.msra.mxu0 %v1150_v29 }
  0x68   :  { %1024 = vmatprep.subr.bf16.mxu0 %v1153_v36 }
  0x69   :  { %1017 = vmatpush3.bf16.msra.mxu1 %v1152_v33 }
  0x6a   :  { %531 = vmatmul.mubr.bf16.vlgmr.msra.gmra.mrb[0].mxu0 %v88_v35  ;;  %1066 = vmatprep.subr.bf16.mxu1 %v1314_v44 }
  0x6b   :  { %1025 = vmatpush3.bf16.msra.mxu0 %v1154_v39  ;;  %610 = vmatprep.mubr.bf16.mxu0 %v93_v56 }
  0x6c   :  { %571 = vmatmul.mubr.bf16.vlgmr.msra.gmra.mrb[0].mxu1 %v90_v41  ;;  %1026 = vmatprep.subr.bf16.mxu0 %v1155_v42  ;;  %v1185_v41 = vld [vmem:[#allocation8 + $0x38] sm:$0xff]   ;;  %v962_v42 = vld [vmem:[%s1462_s4] ss:$0 sm:$0xff]  ;;  %s1316_s4 = smov [#allocation10]  }
  0x6d   :  { %1068 = vmatprep.mubr.msk.bf16.mxu1 %vm1315_vm0, %v1314_v44  ;;  %1067 = vmatpush3.bf16.msra.mxu1 %v1169_v53  ;;  %s900_s28 = sshll.u32 %s1316_s4, 4  ;;  %s901_s28 = int_to_ptr.vmem [resolvable:$true] %s900_s28 }
  0x6e   :  { %1072 = vmatprep.subr.bf16.mxu1 %v1314_v44  ;;  %p1283_p5 = scmp.lt.s32.totalorder %s901_s28, %s901_s28 }
  0x6f   :  { %1027 = vmatpush3.bf16.msra.mxu0 %v1156_v43 }
  0x70   :  { %1028 = vmatprep.subr.bf16.mxu0 %v1157_v45 }
  0x73   :  { %1029 = vmatpush3.bf16.msra.mxu0 %v1158_v46 }
  0x74   :  { %1030 = vmatprep.subr.bf16.mxu0 %v1159_v47  ;;  %1069 = vmatmul.mubr.msk.bf16.vlgmr.msra.gmra.mrb[4].mxu1 %vm494_vm1, %v94_v58 }
  0x75   :  { %1088 = vmatprep.mubr.msk.bf16.mxu1 %vm1315_vm0, %v1314_v44  ;;  %1073 = vmatpush3.bf16.msra.mxu1 %v1170_v0 }
  0x76   :  { %1074 = vmatprep.subr.bf16.mxu1 %v1314_v44 }
  0x77   :  { %1031 = vmatpush3.bf16.msra.mxu0 %v1160_v48 }
  0x78   :  { %1032 = vmatprep.subr.bf16.mxu0 %v1161_v49 }
  0x79   :  { %1075 = vmatpush3.bf16.msra.mxu1 %v1171_v1 }
  0x7a   :  { %1076 = vmatprep.subr.bf16.mxu1 %v1314_v44 }
  0x7b   :  { %1033 = vmatpush3.bf16.msra.mxu0 %v1162_v50 }
  0x7c   :  { %1034 = vmatprep.subr.bf16.mxu0 %v1163_v51  ;;  %v971_v51 = vld [vmem:[%s1464_s6] ss:$0 sm:$0xff]  ;;  %s1278_s6 = scalar_lea.vmem %s901_s28, 128 }
  0x7d   :  { %1077 = vmatpush3.bf16.msra.mxu1 %v1172_v2  ;;  %p1279_p4 = scmp.ne.s32.totalorder %s901_s28, %s1278_s6  ;;  %p1284_p6 = scmp.lt.s32.totalorder %s1278_s6, %s1278_s6 }
  0x7e   :  { %1078 = vmatprep.subr.bf16.mxu1 %v1314_v44 }
  0x7f   :  { %1035 = vmatpush3.bf16.msra.mxu0 %v1164_v52  ;;  %p1285_p7 = por %p1284_p6, %p1283_p5 }
  0x80   :  { %1036 = vmatprep.subr.bf16.mxu0 %v1165_v55 }
  0x81   :  { %1079 = vmatpush3.bf16.msra.mxu1 %v1173_v3  ;;  %p1286_p8 = pnand %p1285_p7, %p1279_p4 }
  0x82   :  { %1080 = vmatprep.subr.bf16.mxu1 %v1314_v44 }
  0x83   :  { %1037 = vmatpush3.bf16.msra.mxu0 %v1166_v59 }
  0x84   :  { %1038 = vmatprep.subr.bf16.mxu0 %v1167_v60 }
  0x85   :  { %1081 = vmatpush3.bf16.msra.mxu1 %v1174_v4 }
  0x86   :  { %1082 = vmatprep.subr.bf16.mxu1 %v1314_v44 }
  0x87   :  { %1039 = vmatpush3.bf16.msra.mxu0 %v1168_v61 }
  0x88   :  { %1092 = vmatprep.subr.bf16.mxu0 %v1314_v44 }
  0x89   :  { %1083 = vmatpush3.bf16.msra.mxu1 %v1175_v5 }
  0x8a   :  { %611 = vmatmul.mubr.bf16.vlgmr.msra.gmra.mrb[4].mxu0 %v92_v63  ;;  %1084 = vmatprep.subr.bf16.mxu1 %v1314_v44 }
  0x8b   :  { %1108 = vmatprep.mubr.msk.bf16.mxu0 %vm1315_vm0, %v1314_v44  ;;  %1093 = vmatpush3.bf16.msra.mxu0 %v1178_v8 }
  0x8c   :  { %1094 = vmatprep.subr.bf16.mxu0 %v1314_v44 }
  0x8d   :  { %1085 = vmatpush3.bf16.msra.mxu1 %v1176_v6 }
  0x8e   :  { %1086 = vmatprep.subr.bf16.mxu1 %v1314_v44 }
  0x8f   :  { %1095 = vmatpush3.bf16.msra.mxu0 %v1179_v9 }
  0x90   :  { %1096 = vmatprep.subr.bf16.mxu0 %v1314_v44 }
  0x91   :  { %1087 = vmatpush3.bf16.msra.mxu1 %v1177_v7 }
  0x93   :  { %1097 = vmatpush3.bf16.msra.mxu0 %v1180_v10 }
  0x94   :  { %1098 = vmatprep.subr.bf16.mxu0 %v1314_v44 }
  0x97   :  { %1099 = vmatpush3.bf16.msra.mxu0 %v1181_v11 }
  0x98   :  { %1100 = vmatprep.subr.bf16.mxu0 %v1314_v44 }
  0x9b   :  { %1101 = vmatpush3.bf16.msra.mxu0 %v1182_v12 }
  0x9c   :  { %1102 = vmatprep.subr.bf16.mxu0 %v1314_v44 }
  0x9f   :  { %1103 = vmatpush3.bf16.msra.mxu0 %v1183_v13 }
  0xa0   :  { %1104 = vmatprep.subr.bf16.mxu0 %v1314_v44 }
  0xa3   :  { %1105 = vmatpush3.bf16.msra.mxu0 %v1184_v40 }
  0xa4   :  { %1106 = vmatprep.subr.bf16.mxu0 %v1314_v44 }
  0xa7   :  { %1107 = vmatpush3.bf16.msra.mxu0 %v1185_v41 }
 0x13d   :  { %v996_v14 = vpop.f32.mrb[0].mxu0 }
 0x13e   :  { %v997_v16 = vpop.f32.mrb[1].mxu0 }
 0x13f   :  { %v998_v17 = vadd.f32 %v997_v16, %v996_v14  ;;  %v999_v18 = vpop.f32.mrb[2].mxu0  ;;  %v1018_v19 = vpop.f32.mrb[0].mxu1 }
 0x140   :  { %v1000_v20 = vpop.f32.mrb[3].mxu0  ;;  %v1019_v22 = vpop.f32.mrb[1].mxu1 }
 0x141   :  { %v533_v21 = vadd.f32 %v998_v17, %v911_v15  ;;  %v1020_v23 = vadd.f32 %v1019_v22, %v1018_v19  ;;  %v1021_v24 = vpop.f32.mrb[2].mxu1 }
 0x142   :  { %v1022_v25 = vpop.f32.mrb[3].mxu1 }
 0x143   :  { %v573_v26 = vadd.f32 %v1020_v23, %v533_v21 }
 0x147   :  { %v652_v27 = vpop.f32.mrb[4].mxu1 }
 0x148   :  { %v1070_v28 = vpop.f32.mrb[5].mxu1 }
 0x149   :  { %v655_v29 = vpop.f32.mrb[6].mxu1 }
 0x14a   :  { %v1071_v30 = vpop.f32.mrb[7].mxu1 }
 0x15d   :  { %v1040_v31 = vpop.f32.mrb[4].mxu0 }
 0x15e   :  { %v1041_v32 = vpop.f32.mrb[5].mxu0 }
 0x15f   :  { %v1042_v33 = vadd.f32 %v1041_v32, %v1040_v31  ;;  %v1043_v34 = vpop.f32.mrb[6].mxu0 }
 0x160   :  { %v1044_v35 = vpop.f32.mrb[7].mxu0 }
 0x161   :  { %v613_v36 = vadd.f32 %v1042_v33, %v573_v26 }
 0x163   :  { %v653_v37 = vadd.f32 %v652_v27, %v613_v36 }
 0x165   :  { %v658_v38 = vmax.f32 %v653_v37, 0.0 }
 0x167   :  { %v659_v39 = vpack.c.bf16 %v658_v38, %v658_v38 }
 0x169   :  { %1089 = vmatmul.mubr.bf16.vlgmr.msra.gmra.mrb[8].mxu1 %v659_v39 }
 0x23c   :  { %v765_v43 = vpop.f32.mrb[8].mxu1 }
 0x23d   :  { %v766_v45 = vadd.f32 %v962_v42, %v765_v43  ;;  %v1090_v46 = vpop.f32.mrb[9].mxu1 }
 0x23e   :  { %v768_v47 = vpop.f32.mrb[10].mxu1 }
 0x23f   :  { %v771_v48 = vmax.f32 %v766_v45, 0.0  ;;  %v1091_v49 = vpop.f32.mrb[11].mxu1 }
 0x241   :  { %v772_v50 = vpack.c.bf16 %v771_v48, %v771_v48 }
 0x243   :  { %1109 = vmatmul.mubr.bf16.vlgmr.msra.gmra.mrb[8].mxu0 %v772_v50 }
 0x316   :  { %v878_v52 = vpop.f32.mrb[8].mxu0 }
 0x317   :  { %v879_v44 = vadd.f32 %v971_v51, %v878_v52  ;;  %v1110_v53 = vpop.f32.mrb[9].mxu0 }
 0x318   :  { %v881_v54 = vpop.f32.mrb[10].mxu0 }
 0x319   :  { %884 = vmax.xlane.f32.xlu0 %v879_v44  ;;  %v1111_v55 = vpop.f32.mrb[11].mxu0 }
 0x3a6   :  { %v885_v56 = vpop.xlane.xlu0 %884 }
 0x3a7   :  { %v886_v57 = vsub.f32 %v879_v44, %v885_v56 }
 0x3a9   :  { %v887_v58 = vmul.f32 1.442695, %v886_v57 }
 0x3ab   :  { %1186 = vpow2.f32 %v887_v58 }
 0x3b5   :  { %v1187_v59 = vpop.eup %1186 }
 0x3b6   :  { %889 = vadd.xlane.f32.xlu0 %v1187_v59 }
 0x443   :  { %v890_v60 = vpop.xlane.xlu0 %889 }
 0x444   :  { %1188 = vrcp.f32 %v890_v60 }
 0x44e   :  { %v1189_v61 = vpop.eup %1188 }
 0x44f   :  { %v892_v62 = vmul.f32 %v1189_v61, %v1187_v59 }
 0x451   :  { %893 = vst [vmem:[#allocation10] sm:$0xff] %v892_v62 }
 0x452   :  { %1289 = shalt.err (!%p1286_p8)
}
 0x453   :  { %s1290_s8 = scalar_lea.hbm %s1465_s7, 128 }
 0x454   :  { %p1291_p9 = scmp.ne.s32.totalorder %s1465_s7, %s1290_s8  ;;  %p1294_p10 = scmp.lt.u32.totalorder %s1290_s8, %s1465_s7 }
 0x456   :  { %p1296_p11 = pnand %p1294_p10, %p1291_p9 }
 0x458   :  { %1299 = shalt.err (!%p1296_p11)
}
 0x459   :  { %903 = dma.vmem_to_hbm [thread:$0]  %s901_s28, 128, %s1465_s7, [#allocation4]  }
 0x45a   :  { %1306 = dma.done.wait [#allocation4], 128  }
 0x45b   :  { %1307 = vsyncadd [#allocation4], 4294967168 }
 0x45c   :  { %907 = vsyncpa [#allocation3], 1 }
 0x45d   :  { %908 = vsyncpa [#allocation6], 1 }
 0x45e   :  { %909 = vsyncpa [#allocation9], 1 }
 0x45f   :  { %910 = vsyncpa [#allocation4], 1 }

</bundles_post_ra>
